<compile_context>
chip_gen: v6e
topology: v6e:2x2x1
jax: 0.10.0
libtpu: 0.0.40
codegen_flags: <defaults>
</compile_context>

<pallas_src>
import functools

import jax
import jax.numpy as jnp
from jax.experimental import pallas as pl
from jax.experimental.pallas import tpu as pltpu


def _round_up(x, m):
    return ((x + m - 1) // m) * m


def _pick_tile_n(N, C, tile_n):
    """Choose how many batch rows (lanes) each grid step processes."""
    # Tiny batches: one full-extent tile (no 128-multiple constraint, no mask).
    if N <= 1024 and (tile_n is None or tile_n >= N):
        return N
    if tile_n is None:
        # VMEM: 2 inputs x 2 pipeline buffers x sublane-padded C x tile_n x 4B.
        per_lane_bytes = 2 * 2 * _round_up(C, 16) * 4
        vmem_cap = (8 * 1024 * 1024) // per_lane_bytes   # safe under default scoped VMEM
        step_cap = 8192                                   # amortize ~0.35us/step overhead
        balance_cap = _round_up(pl.cdiv(N, 2), 128)       # >=2 tiles so both v7x TCs work
        tile_n = max(128, min(step_cap, vmem_cap, balance_cap))
    # Block lane dim must be a multiple of 128 (or the full extent).
    tile_n = min(_round_up(tile_n, 128), _round_up(N, 128))
    if tile_n >= N:
        return N
    return tile_n


def _aue_loss_kernel(pred_ref, l_ref, out_ref, *, a, q, tile_n, n_rows,
                     masked_tail, labels_normalized, approx_recip):
    """One (C, TILE_N) tile -> partial sum of per-row AUE losses (SMEM scalar)."""
    i = pl.program_id(0)
    const = (a - 1.0) ** q
    inv_q = 1.0 / q

    def tile_loss_sum(masked):
        pred = pred_ref[...].astype(jnp.float32)   # (C, TILE_N)
        lbl = l_ref[...].astype(jnp.float32)       # (C, TILE_N)

        if masked:
            # Columns past the real batch size (last partial tile): zero both
            # operands so exp/sums stay finite, guard the denominator, and zero
            # the loss contribution so OOB garbage cannot poison the mean.
            col = jax.lax.broadcasted_iota(jnp.int32, (1, tile_n), 1) + i * tile_n
            valid = col < n_rows                    # (1, TILE_N)
            z = jnp.where(valid, pred * 5.0, 0.0)   # pred / 0.2 -> pred * 5.0
            lbl = jnp.where(valid, lbl, 0.0)
        else:
            z = pred * 5.0

        # Numerically-stable exp; the shift cancels exactly in the fused ratio.
        z = z - jnp.max(z, axis=0, keepdims=True)
        e = jnp.exp(z)

        # Fused softmax + label normalization:
        #   sum((L / sum L) * (e / sum e)) == sum(L * e) / (sum(e) * sum(L))
        num = jnp.sum(lbl * e, axis=0, keepdims=True)          # (1, TILE_N)
        denom = jnp.sum(e, axis=0, keepdims=True)              # (1, TILE_N)
        if not labels_normalized:
            denom = denom * jnp.sum(lbl, axis=0, keepdims=True)
        if masked:
            denom = jnp.where(valid, denom, 1.0)
        s = num * pl.reciprocal(denom, approx=approx_recip)    # (1, TILE_N)

        # (pow(a - s, q) - (a - 1)^q) / q ; constants folded at trace time.
        loss = (jnp.power(a - s, q) - const) * inv_q           # (1, TILE_N)
        if masked:
            loss = jnp.where(valid, loss, 0.0)
        return jnp.sum(loss)

    if masked_tail:
        @pl.when(i < pl.num_programs(0) - 1)
        def _():
            out_ref[0, 0] = tile_loss_sum(masked=False)

        @pl.when(i == pl.num_programs(0) - 1)
        def _():
            out_ref[0, 0] = tile_loss_sum(masked=True)
    else:
        out_ref[0, 0] = tile_loss_sum(masked=False)


def aue_loss(pred, L, *, a=1.5, q=0.9, scale=1.0, tile_n=None,
             labels_normalized=False, approx_recip=False):
    """Pallas implementation of AUELoss.forward. pred, L: (N, C). Returns scalar.

    labels_normalized=True skips the sum(L) reduction (labels already sum to 1).
    approx_recip=True uses the EUP approximate reciprocal (re-check tolerance).
    """
    N, C = pred.shape
    assert L.shape == (N, C)

    # Lane-dense layout: classes on sublanes, batch on lanes. In production the
    # producer should emit (C, N) directly; here the single upstream transpose
    # is left to XLA to fuse.
    pred_t = jnp.transpose(pred)
    l_t = jnp.transpose(L)

    tile = _pick_tile_n(N, C, tile_n)
    num_tiles = pl.cdiv(N, tile)

    kernel = functools.partial(
        _aue_loss_kernel, a=float(a), q=float(q), tile_n=tile, n_rows=N,
        masked_tail=(N % tile) != 0, labels_normalized=labels_normalized,
        approx_recip=approx_recip,
    )

    partials = pl.pallas_call(
        kernel,
        out_shape=jax.ShapeDtypeStruct((num_tiles, 1), jnp.float32),
        grid=(num_tiles,),
        in_specs=[
            pl.BlockSpec((C, tile), lambda i: (0, i)),
            pl.BlockSpec((C, tile), lambda i: (0, i)),
        ],
        out_specs=pl.BlockSpec((1, 1), lambda i: (i, 0),
                               memory_space=pltpu.MemorySpace.SMEM),
        compiler_params=pltpu.CompilerParams(
            # Independent per-tile partials -> tiles shard across v7x's 2 TCs.
            dimension_semantics=("parallel",),
        ),
    )(pred_t, l_t)

    # Mean over N and scale finished in the wrapper with a tiny reduction.
    return jnp.sum(partials) * (scale / N)


def aue_loss_ref(pred, L, *, a=1.5, q=0.9, scale=1.0):
    """Pure-JAX reference matching the PyTorch module."""
    p = jax.nn.softmax(pred / 0.2, axis=1)
    pl_norm = L / jnp.sum(L, axis=1, keepdims=True)
    s = jnp.sum(pl_norm * p, axis=1)
    loss = (jnp.power(a - s, q) - (a - 1.0) ** q) / q
    return jnp.mean(loss) * scale


if __name__ == "__main__":
    key = jax.random.PRNGKey(0)
    k1, k2, k3, k4, k5, k6 = jax.random.split(key, 6)
    C = 10  # module default num_classes

    # Case 1: tiny batch -> single full-extent tile; one-hot labels; also
    # exercise the labels_normalized fast path (one-hot rows sum to 1).
    N1 = 8
    pred1 = jax.random.normal(k1, (N1, C), dtype=jnp.float32)
    L1 = jax.nn.one_hot(jax.random.randint(k2, (N1,), 0, C), C, dtype=jnp.float32)
    ref1 = aue_loss_ref(pred1, L1)
    out1 = jax.block_until_ready(aue_loss(pred1, L1))
    assert jnp.allclose(out1, ref1, rtol=1e-5, atol=1e-6), (out1, ref1)
    out1n = jax.block_until_ready(aue_loss(pred1, L1, labels_normalized=True))
    assert jnp.allclose(out1n, ref1, rtol=1e-5, atol=1e-6), (out1n, ref1)

    # Case 2: soft labels (row sums != 1), non-default scale, default tiling.
    N2 = 50
    pred2 = jax.random.normal(k3, (N2, C), dtype=jnp.float32)
    L2 = jax.nn.softmax(
        jax.random.normal(k4, (N2, C), dtype=jnp.float32) * 0.7, axis=1) + 0.05
    ref2 = aue_loss_ref(pred2, L2, scale=2.0)
    out2 = jax.block_until_ready(aue_loss(pred2, L2, scale=2.0))
    assert jnp.allclose(out2, ref2, rtol=1e-5, atol=1e-6), (out2, ref2)

    # Case 3: multi-tile grid with a masked partial last tile (N % tile_n != 0).
    N3 = 300
    pred3 = jax.random.normal(k5, (N3, C), dtype=jnp.float32)
    L3 = jax.nn.one_hot(jax.random.randint(k6, (N3,), 0, C), C, dtype=jnp.float32)
    ref3 = aue_loss_ref(pred3, L3)
    out3 = jax.block_until_ready(aue_loss(pred3, L3, tile_n=128))
    assert jnp.allclose(out3, ref3, rtol=1e-5, atol=1e-6), (out3, ref3)

    print("KERNEL_OK")
</pallas_src>

<mosaic_0001>
module attributes {stable_mosaic.version = 11 : i64} {
  func.func @_aue_loss_kernel(%arg0: i32, %arg1: memref<10x8xf32, #tpu.memory_space<vmem>>, %arg2: memref<10x8xf32, #tpu.memory_space<vmem>>, %arg3: memref<1x1xf32, #tpu.memory_space<smem>>) attributes {dimension_semantics = [#tpu.dimension_semantics<parallel>], iteration_bounds = array<i64: 1>, scalar_prefetch = 0 : i64, scratch_operands = 0 : i64, tpu.core_type = #tpu.core_type<tc>, window_params = [{transform_indices = @transform_0, window_bounds = array<i64: 10, 8>}, {transform_indices = @transform_1, window_bounds = array<i64: 10, 8>}, {transform_indices = @transform_2, window_bounds = array<i64: 1, 1>}]} {
    %c0 = arith.constant 0 : index
    %c0_0 = arith.constant 0 : index
    %0 = vector.load %arg1[%c0, %c0_0] : memref<10x8xf32, #tpu.memory_space<vmem>>, vector<10x8xf32>
    %c0_1 = arith.constant 0 : index
    %c0_2 = arith.constant 0 : index
    %1 = vector.load %arg2[%c0_1, %c0_2] : memref<10x8xf32, #tpu.memory_space<vmem>>, vector<10x8xf32>
    %cst = arith.constant 5.000000e+00 : f32
    %2 = vector.broadcast %cst : f32 to vector<10x8xf32>
    %3 = arith.mulf %0, %2 : vector<10x8xf32>
    %cst_3 = arith.constant dense<0xFF800000> : vector<8xf32>
    %4 = vector.multi_reduction <maximumf>, %3, %cst_3 [0] : vector<10x8xf32> to vector<8xf32>
    %5 = vector.shape_cast %4 : vector<8xf32> to vector<1x8xf32>
    %6 = vector.broadcast %5 : vector<1x8xf32> to vector<10x8xf32>
    %7 = arith.subf %3, %6 : vector<10x8xf32>
    %8 = math.exp %7 : vector<10x8xf32>
    %9 = arith.mulf %1, %8 : vector<10x8xf32>
    %cst_4 = arith.constant dense<0.000000e+00> : vector<8xf32>
    %10 = vector.multi_reduction <add>, %9, %cst_4 [0] : vector<10x8xf32> to vector<8xf32>
    %11 = vector.shape_cast %10 : vector<8xf32> to vector<1x8xf32>
    %cst_5 = arith.constant dense<0.000000e+00> : vector<8xf32>
    %12 = vector.multi_reduction <add>, %8, %cst_5 [0] : vector<10x8xf32> to vector<8xf32>
    %13 = vector.shape_cast %12 : vector<8xf32> to vector<1x8xf32>
    %cst_6 = arith.constant dense<0.000000e+00> : vector<8xf32>
    %14 = vector.multi_reduction <add>, %1, %cst_6 [0] : vector<10x8xf32> to vector<8xf32>
    %15 = vector.shape_cast %14 : vector<8xf32> to vector<1x8xf32>
    %16 = arith.mulf %13, %15 : vector<1x8xf32>
    %17 = tpu.reciprocal %16 : vector<1x8xf32> -> vector<1x8xf32>
    %18 = arith.mulf %11, %17 : vector<1x8xf32>
    %cst_7 = arith.constant 1.500000e+00 : f32
    %19 = vector.broadcast %cst_7 : f32 to vector<1x8xf32>
    %20 = arith.subf %19, %18 : vector<1x8xf32>
    %cst_8 = arith.constant 0.899999976 : f32
    %21 = vector.broadcast %cst_8 : f32 to vector<1x8xf32>
    %22 = math.powf %20, %21 : vector<1x8xf32>
    %cst_9 = arith.constant 0.535886705 : f32
    %23 = vector.broadcast %cst_9 : f32 to vector<1x8xf32>
    %24 = arith.subf %22, %23 : vector<1x8xf32>
    %cst_10 = arith.constant 1.11111116 : f32
    %25 = vector.broadcast %cst_10 : f32 to vector<1x8xf32>
    %26 = arith.mulf %24, %25 : vector<1x8xf32>
    %27 = vector.shape_cast %26 : vector<1x8xf32> to vector<1x1x8xf32>
    %cst_11 = arith.constant dense<0.000000e+00> : vector<1xf32>
    %28 = vector.multi_reduction <add>, %27, %cst_11 [1, 2] : vector<1x1x8xf32> to vector<1xf32>
    %29 = vector.shape_cast %28 : vector<1xf32> to vector<1x1x1xf32>
    %30 = vector.extract %29[0, 0, 0] : f32 from vector<1x1x1xf32>
    %c0_12 = arith.constant 0 : index
    %c0_13 = arith.constant 0 : index
    %31 = memref.load %arg3[%c0_12, %c0_13] : memref<1x1xf32, #tpu.memory_space<smem>>
    memref.store %30, %arg3[%c0_12, %c0_13] : memref<1x1xf32, #tpu.memory_space<smem>>
    return
  }
  func.func @transform_0(%arg0: i32) -> (i32, i32) {
    %c0_i32 = arith.constant 0 : i32
    %c0_i32_0 = arith.constant 0 : i32
    return %c0_i32, %arg0 : i32, i32
  }
  func.func @transform_1(%arg0: i32) -> (i32, i32) {
    %c0_i32 = arith.constant 0 : i32
    %c0_i32_0 = arith.constant 0 : i32
    return %c0_i32, %arg0 : i32, i32
  }
  func.func @transform_2(%arg0: i32) -> (i32, i32) {
    %c0_i32 = arith.constant 0 : i32
    %c0_i32_0 = arith.constant 0 : i32
    return %arg0, %c0_i32 : i32, i32
  }
}

</mosaic_0001>

<bundles_post_ra>
// kernel: tpu_custom_call.1
= control target key start
LH: loop header
LB: loop body
LE: loop exit
PB: predicated region body
PF: predicated region fallthrough
CT: control target
= control target key end

     0   :  { %vm18_vm0 = vcmask 64512   ;;  %vm20_vm1 = vcmask 58368   ;;  %s186_s0 = inlined_call_operand.vmem [shape: f32[10,8], index: 0, kind: input, shape index: {}]   ;;  %s187_s1 = inlined_call_operand.vmem [shape: f32[10,8], index: 1, kind: input, shape index: {}]   ;;  %s188_s2 = inlined_call_operand.hbm [shape: f32[1,1], index: 2, kind: output, shape index: {}]  }
   0x1   :  { %v12_v0 = vld [vmem:[%s186_s0] sm:$0xff]  ;;  %v13_v1 = vld [vmem:[%s186_s0 + $0x8] sm:$0x3] }
   0x2   :  { %v16_v2 = vmul.f32 5.0, %v12_v0  ;;  %v17_v3 = vmul.f32 5.0, %v13_v1 }
   0x3   :  { %7 = vsyncpa [#allocation3], 0  ;;  %v14_v13 = vld [vmem:[%s187_s1] sm:$0xff]  ;;  %v15_v14 = vld [vmem:[%s187_s1 + $0x8] sm:$0x3]  ;;  %vm71_vm7 = vcmask 57344  }
   0x4   :  { %v19_v4 = vsel %vm18_vm0, %v16_v2, -inf  ;;  %v21_v5 = vsel %vm20_vm1, %v17_v3, -inf  ;;  %v55_v19 = vsel %vm18_vm0, %v14_v13, 0.0  ;;  %v56_v20 = vsel %vm20_vm1, %v15_v14, 0.0  ;;  %s147_s16 = smov [#allocation2]  }
   0x5   :  { %v22_v6 = vmax.f32 %v19_v4, %v21_v5  ;;  %v57_v21 = vadd.f32 %v56_v20, %v55_v19 }
   0x7   :  { %v23_v7 = vrot.slane %v22_v6, 4  ;;  %v58_v22 = vrot.slane %v57_v21, 4 }
   0x9   :  { %v24_v8 = vmax.f32 %v22_v6, %v23_v7  ;;  %v59_v23 = vadd.f32 %v58_v22, %v57_v21 }
   0xb   :  { %v25_v9 = vrot.slane %v24_v8, 2  ;;  %v60_v28 = vrot.slane %v59_v23, 2 }
   0xd   :  { %v26_v10 = vmax.f32 %v24_v8, %v25_v9  ;;  %v61_v36 = vadd.f32 %v60_v28, %v59_v23 }
   0xf   :  { %v27_v11 = vrot.slane %v26_v10, 1  ;;  %v62_v40 = vrot.slane %v61_v36, 1 }
  0x11   :  { %v28_v12 = vmax.f32 %v26_v10, %v27_v11  ;;  %v63_v44 = vadd.f32 %v62_v40, %v61_v36 }
  0x13   :  { %v29_v15 = vsub.f32 %v16_v2, %v28_v12  ;;  %v30_v16 = vsub.f32 %v17_v3, %v28_v12 }
  0x15   :  { %v31_v17 = vmul.f32 1.442695, %v29_v15  ;;  %v33_v18 = vmul.f32 1.442695, %v30_v16 }
  0x17   :  { %127 = vpow2.f32 %v31_v17 }
  0x18   :  { %129 = vpow2.f32 %v33_v18 }
  0x24   :  { %v128_v24 = vpop.eup %127 }
  0x25   :  { %v130_v25 = vpop.eup %129  ;;  %v35_v26 = vmul.f32 %v128_v24, %v14_v13  ;;  %v46_v27 = vsel %vm18_vm0, %v128_v24, 0.0 }
  0x26   :  { %v36_v29 = vmul.f32 %v130_v25, %v15_v14  ;;  %v47_v30 = vsel %vm20_vm1, %v130_v25, 0.0 }
  0x27   :  { %v37_v31 = vsel %vm18_vm0, %v35_v26, 0.0  ;;  %v48_v32 = vadd.f32 %v47_v30, %v46_v27 }
  0x28   :  { %v38_v33 = vsel %vm20_vm1, %v36_v29, 0.0 }
  0x29   :  { %v39_v34 = vadd.f32 %v38_v33, %v37_v31  ;;  %v49_v35 = vrot.slane %v48_v32, 4 }
  0x2b   :  { %v50_v37 = vadd.f32 %v49_v35, %v48_v32  ;;  %v40_v38 = vrot.slane %v39_v34, 4 }
  0x2d   :  { %v51_v39 = vrot.slane %v50_v37, 2  ;;  %v41_v42 = vadd.f32 %v40_v38, %v39_v34 }
  0x2f   :  { %v52_v41 = vadd.f32 %v51_v39, %v50_v37  ;;  %v42_v46 = vrot.slane %v41_v42, 2 }
  0x31   :  { %v53_v43 = vrot.slane %v52_v41, 1  ;;  %v43_v48 = vadd.f32 %v42_v46, %v41_v42 }
  0x33   :  { %v54_v45 = vadd.f32 %v53_v43, %v52_v41  ;;  %v44_v49 = vrot.slane %v43_v48, 1 }
  0x35   :  { %v64_v47 = vmul.f32 %v63_v44, %v54_v45  ;;  %v45_v50 = vadd.f32 %v44_v49, %v43_v48 }
  0x37   :  { %131 = vrcp.f32 %v64_v47 }
  0x44   :  { %v132_v51 = vpop.eup %131 }
  0x45   :  { %v66_v52 = vmul.f32 %v132_v51, %v45_v50 }
  0x47   :  { %v67_v53 = vsub.f32 1.5, %v66_v52 }
  0x49   :  { %v102_v54 = vand.u32 2147483647, %v67_v53  ;;  %vm106_vm2 = vcmp.lt.f32.partialorder %v67_v53, 0  ;;  %vm107_vm3 = vcmp.eq.f32.partialorder %v67_v53, 0  ;;  %vm119_vm5 = vcmp.ne.f32.partialorder %v67_v53, %v67_v53 }
  0x4a   :  { %vm108_vm6 = vcmp.eq.f32.partialorder %v67_v53, 1065353216 }
  0x4b   :  { %133 = vlog2.f32 %v102_v54  ;;  %vm111_vm4 = vcmp.eq.f32.partialorder %v102_v54, 2139095040 }
  0x58   :  { %v134_v55 = vpop.eup %133 }
  0x59   :  { %v104_v56 = vmul.f32 0.9, %v134_v55 }
  0x5b   :  { %135 = vpow2.f32 %v104_v56 }
  0x68   :  { %v136_v57 = vpop.eup %135 }
  0x69   :  { %v112_v58 = vsel %vm106_vm2, 2143289344, %v136_v57 }
  0x6a   :  { %v113_v59 = vsel %vm107_vm3, 0, %v112_v58 }
  0x6b   :  { %v118_v60 = vsel %vm111_vm4, 2139095040, %v113_v59 }
  0x6c   :  { %v122_v61 = vsel %vm119_vm5, 2143289344, %v118_v60 }
  0x6d   :  { %v123_v62 = vsel %vm108_vm6, 1065353216, %v122_v61 }
  0x6e   :  { %v97_v63 = vadd.f32 -0.5358867, %v123_v62 }
  0x70   :  { %v70_v0 = vmul.f32 1.1111112, %v97_v63 }
  0x72   :  { %v72_v1 = vsel %vm71_vm7, %v70_v0, 0.0 }
  0x73   :  { %73 = vadd.xlane.f32.xlu0 %v72_v1 }
  0xfc   :  { %v74_v2 = vpop.xlane.xlu0 %73 }
  0xfd   :  { %v75_v3 = vrot.slane %v74_v2, 4 }
  0xff   :  { %v76_v4 = vadd.f32 %v75_v3, %v74_v2 }
 0x101   :  { %v77_v5 = vrot.slane %v76_v4, 2 }
 0x103   :  { %v78_v6 = vadd.f32 %v77_v5, %v76_v4 }
 0x105   :  { %v79_v7 = vrot.slane %v78_v6, 1 }
 0x107   :  { %v80_v8 = vadd.f32 %v79_v7, %v78_v6 }
 0x109   :  { %124 = vpush %v80_v8 }
 0x13a   :  { %s125_s1 = spop %124 }
 0x13b   :  { %83 = sst [smem:[#allocation2]] %s125_s1 }
 0x13c   :  { %91 = dma.smem_to_hbm %s147_s16, 16, %s188_s2, [#allocation3]  }
 0x13d   :  { %145 = dma.done.wait [#allocation3], 16  }
 0x13e   :  { %146 = vsyncadd [#allocation3], 4294967280 }
 0x13f   :  { %95 = sfence }
 0x140   :  { %96 = vsyncpa [#allocation3], 1 }

</bundles_post_ra>
